<compile_context>
chip_gen: v7x
topology: tpu7x:2x2x1
jax: 0.10.0
libtpu: 0.0.40
codegen_flags: <defaults>
</compile_context>

<pallas_src>
import functools

import jax
import jax.numpy as jnp
from jax import lax
from jax.experimental import pallas as pl
from jax.experimental.pallas import tpu as pltpu


_LANE = 128
_SUBLANE = 8
_MAX_TS = 8192  # lanes; HBM roofline is already saturated well below this


def _round_up(n, m):
    return ((n + m - 1) // m) * m


def _vmem_capacity_bytes():
    try:
        return int(pltpu.get_tpu_info().vmem_capacity_bytes)
    except Exception:
        return 64 * 1024 * 1024  # conservative: v7x physical VMEM per core


def _vmem_limits():
    cap = _vmem_capacity_bytes()
    vmem_limit = min(cap * 3 // 4, 112 * 1024 * 1024)
    budget = vmem_limit - (2 << 20)  # headroom for outputs / internals
    return vmem_limit, budget


def _choose_tile(S, bytes_per_lane, budget_bytes):
    """Pick spatial tile width TS (multiple of 128) and padded spatial size."""
    max_ts = max(_LANE,
                 min(_MAX_TS, (budget_bytes // max(bytes_per_lane, 1)) // _LANE * _LANE))
    best = None
    if S % _LANE == 0:
        n128 = S // _LANE
        for blocks in range(min(max_ts, S) // _LANE, 0, -1):
            if n128 % blocks == 0:
                ts = blocks * _LANE
                if best is None:
                    best = ts
                if (n128 // blocks) % 2 == 0:  # even tile count -> megacore-friendly
                    best = ts
                    break
    if best is not None and best * 4 >= min(max_ts, S):
        return best, S
    # fall back to zero-padding S up to a multiple of a large tile
    ts = min(max_ts, _round_up(S, _LANE))
    return ts, _round_up(S, ts)


# --------------------------------------------------------------------------
# Kernels
# --------------------------------------------------------------------------

def _dice_sums_soft_kernel(x_ref, y_ref, inter_ref, denom_ref, inter_acc, denom_acc):
    """x_ref, y_ref: (R, TS).  Lane-parallel accumulate; reduce once per split."""
    k = pl.program_id(1)

    @pl.when(k == 0)
    def _():
        inter_acc[...] = jnp.zeros_like(inter_acc)
        denom_acc[...] = jnp.zeros_like(denom_acc)

    x = x_ref[...].astype(jnp.float32)
    y = y_ref[...].astype(jnp.float32)
    inter_acc[...] += x * y
    denom_acc[...] += x * x + y * y

    @pl.when(k == pl.num_programs(1) - 1)
    def _():
        inter_ref[0] = jnp.sum(inter_acc[...], axis=-1, keepdims=True)  # (R, 1)
        denom_ref[0] = jnp.sum(denom_acc[...], axis=-1, keepdims=True)


def _dice_sums_label_kernel(x_ref, lab_ref, inter_ref, denom_ref, inter_acc, denom_acc):
    """x_ref: (B, C, TS); lab_ref: (B, 1, TS) int32.  One-hot built in-kernel."""
    k = pl.program_id(1)

    @pl.when(k == 0)
    def _():
        inter_acc[...] = jnp.zeros_like(inter_acc)
        denom_acc[...] = jnp.zeros_like(denom_acc)

    x = x_ref[...].astype(jnp.float32)
    lab = lab_ref[...]                                       # (B, 1, TS) int32
    ch = lax.broadcasted_iota(jnp.int32, x.shape, 1)         # channel ids
    m = (lab == ch).astype(jnp.float32)                      # (B, C, TS) one-hot
    inter_acc[...] += x * m
    denom_acc[...] += x * x + m                              # m*m == m

    @pl.when(k == pl.num_programs(1) - 1)
    def _():
        inter_ref[0] = jnp.sum(inter_acc[...], axis=-1)      # (B, C)
        denom_ref[0] = jnp.sum(denom_acc[...], axis=-1)


# --------------------------------------------------------------------------
# Pallas-call wrappers
# --------------------------------------------------------------------------

def _pallas_dice_sums_soft(xf, yf):
    """xf, yf: (R, S) float -> (inter, denom), each (R,) float32."""
    R, S = xf.shape
    R_pad = _round_up(R, _SUBLANE)
    x_isz = jnp.dtype(xf.dtype).itemsize
    y_isz = jnp.dtype(yf.dtype).itemsize
    vmem_limit, budget = _vmem_limits()
    # bytes per spatial lane: 2 double-buffered inputs + 2 f32 scratch accumulators
    bpl = 2 * R_pad * x_isz + 2 * R_pad * y_isz + 2 * R_pad * 4
    ts, s_pad = _choose_tile(S, bpl, budget)
    if s_pad != S:
        xf = jnp.pad(xf, ((0, 0), (0, s_pad - S)))
        yf = jnp.pad(yf, ((0, 0), (0, s_pad - S)))
    num_tiles = s_pad // ts
    nsplit = 2 if num_tiles % 2 == 0 else 1
    tps = num_tiles // nsplit

    inter_p, denom_p = pl.pallas_call(
        _dice_sums_soft_kernel,
        out_shape=(
            jax.ShapeDtypeStruct((nsplit, R, 1), jnp.float32),
            jax.ShapeDtypeStruct((nsplit, R, 1), jnp.float32),
        ),
        grid_spec=pltpu.PrefetchScalarGridSpec(
            num_scalar_prefetch=0,
            grid=(nsplit, tps),
            in_specs=[
                pl.BlockSpec((R, ts), lambda p, k: (0, p * tps + k)),
                pl.BlockSpec((R, ts), lambda p, k: (0, p * tps + k)),
            ],
            out_specs=[
                pl.BlockSpec((1, R, 1), lambda p, k: (p, 0, 0)),
                pl.BlockSpec((1, R, 1), lambda p, k: (p, 0, 0)),
            ],
            scratch_shapes=[
                pltpu.VMEM((R, ts), jnp.float32),
                pltpu.VMEM((R, ts), jnp.float32),
            ],
        ),
        compiler_params=pltpu.CompilerParams(
            dimension_semantics=("parallel", "arbitrary"),
            vmem_limit_bytes=vmem_limit,
        ),
    )(xf, yf)
    inter = jnp.sum(inter_p, axis=0)[:, 0]
    denom = jnp.sum(denom_p, axis=0)[:, 0]
    return inter, denom


def _pallas_dice_sums_label(xf, labf):
    """xf: (B, C, S) float; labf: (B, 1, S) int32 -> (inter, denom), each (B, C)."""
    B, C, S = xf.shape
    C_pad = _round_up(C, _SUBLANE)
    x_isz = jnp.dtype(xf.dtype).itemsize
    vmem_limit, budget = _vmem_limits()
    # bytes per spatial lane: double-buffered x + double-buffered labels + 2 f32 accs
    bpl = 2 * B * C_pad * x_isz + 2 * B * _SUBLANE * 4 + 2 * B * C_pad * 4
    ts, s_pad = _choose_tile(S, bpl, budget)
    if s_pad != S:
        xf = jnp.pad(xf, ((0, 0), (0, 0), (0, s_pad - S)))
        # pad labels with C (an invalid class) so padded region contributes 0
        labf = jnp.pad(labf, ((0, 0), (0, 0), (0, s_pad - S)), constant_values=C)
    num_tiles = s_pad // ts
    nsplit = 2 if num_tiles % 2 == 0 else 1
    tps = num_tiles // nsplit

    inter_p, denom_p = pl.pallas_call(
        _dice_sums_label_kernel,
        out_shape=(
            jax.ShapeDtypeStruct((nsplit, B, C), jnp.float32),
            jax.ShapeDtypeStruct((nsplit, B, C), jnp.float32),
        ),
        grid_spec=pltpu.PrefetchScalarGridSpec(
            num_scalar_prefetch=0,
            grid=(nsplit, tps),
            in_specs=[
                pl.BlockSpec((B, C, ts), lambda p, k: (0, 0, p * tps + k)),
                pl.BlockSpec((B, 1, ts), lambda p, k: (0, 0, p * tps + k)),
            ],
            out_specs=[
                pl.BlockSpec((1, B, C), lambda p, k: (p, 0, 0)),
                pl.BlockSpec((1, B, C), lambda p, k: (p, 0, 0)),
            ],
            scratch_shapes=[
                pltpu.VMEM((B, C, ts), jnp.float32),
                pltpu.VMEM((B, C, ts), jnp.float32),
            ],
        ),
        compiler_params=pltpu.CompilerParams(
            dimension_semantics=("parallel", "arbitrary"),
            vmem_limit_bytes=vmem_limit,
        ),
    )(xf, labf)
    return jnp.sum(inter_p, axis=0), jnp.sum(denom_p, axis=0)


# --------------------------------------------------------------------------
# Public forward (matches SoftDiceLossSquared.forward with apply_nonlin=None)
# --------------------------------------------------------------------------

@functools.partial(jax.jit, static_argnames=("smooth", "batch_dice", "do_bg"))
def soft_dice_loss_squared(x, y, smooth=1.0, batch_dice=False, do_bg=True):
    """x: (B, C, *spatial) predictions (apply_nonlin=None).
    y: either same shape as x (soft / one-hot target) or an integer label map
    of shape (B, *spatial) / (B, 1, *spatial)."""
    # TODO(synk): apply_nonlin callable hyperparameter not supported (assumed None).
    B, C = x.shape[0], x.shape[1]
    S = 1
    for d in x.shape[2:]:
        S *= d

    # mirror the PyTorch no_grad target handling
    if y.ndim != x.ndim:
        y = y.reshape((y.shape[0], 1) + tuple(y.shape[1:]))

    if y.shape == x.shape:
        # soft / one-hot target already matching x: 2D (B*C, S) row layout
        inter, denom = _pallas_dice_sums_soft(x.reshape(B * C, S),
                                              y.reshape(B * C, S))
        inter = inter.reshape(B, C)
        denom = denom.reshape(B, C)
    else:
        # integer label map: one-hot mask built inside the kernel (no HBM one-hot)
        labf = y.astype(jnp.int32).reshape(B, 1, S)
        inter, denom = _pallas_dice_sums_label(x.reshape(B, C, S), labf)

    if batch_dice:
        inter = jnp.sum(inter, axis=0)
        denom = jnp.sum(denom, axis=0)
    dc = 2.0 * (inter + smooth) / (denom + smooth)
    if not do_bg:
        dc = dc[1:] if batch_dice else dc[:, 1:]
    return -jnp.mean(dc)


if __name__ == "__main__":
    key = jax.random.PRNGKey(0)
    kx, ky = jax.random.split(key)

    B, C, H, W = 2, 4, 16, 16
    x = jax.random.normal(kx, (B, C, H, W), dtype=jnp.float32)
    y_labels = jax.random.randint(ky, (B, H, W), 0, C, dtype=jnp.int32)

    # label-map path (one-hot built inside the kernel)
    loss_lab = soft_dice_loss_squared(x, y_labels, smooth=1.0)
    # matching-shape soft/one-hot path (2D row kernel)
    y_oh = jax.nn.one_hot(y_labels, C, axis=1, dtype=jnp.float32)
    loss_soft = soft_dice_loss_squared(x, y_oh, smooth=1.0)
    jax.block_until_ready((loss_lab, loss_soft))

    # pure-JAX reference
    inter_ref = jnp.sum(x * y_oh, axis=(2, 3)) + 1.0
    denom_ref = jnp.sum(x * x + y_oh * y_oh, axis=(2, 3)) + 1.0
    loss_ref = -jnp.mean(2.0 * inter_ref / denom_ref)

    assert jnp.allclose(loss_lab, loss_ref, rtol=1e-5, atol=1e-5), (loss_lab, loss_ref)
    assert jnp.allclose(loss_soft, loss_ref, rtol=1e-5, atol=1e-5), (loss_soft, loss_ref)

    print("KERNEL_OK")
</pallas_src>

<mosaic_0001>
module attributes {stable_mosaic.version = 11 : i64} {
  func.func @_dice_sums_label_kernel(%arg0: i32, %arg1: i32, %arg2: memref<2x4x128xf32, #tpu.memory_space<vmem>>, %arg3: memref<2x1x128xi32, #tpu.memory_space<vmem>>, %arg4: memref<1x2x4xf32, #tpu.memory_space<vmem>>, %arg5: memref<1x2x4xf32, #tpu.memory_space<vmem>>, %arg6: memref<2x4x128xf32, #tpu.memory_space<vmem>>, %arg7: memref<2x4x128xf32, #tpu.memory_space<vmem>>) attributes {dimension_semantics = [#tpu.dimension_semantics<parallel>, #tpu.dimension_semantics<arbitrary>], iteration_bounds = array<i64: 2, 1>, scalar_prefetch = 0 : i64, scratch_operands = 2 : i64, tpu.core_type = #tpu.core_type<tc>, window_params = [{transform_indices = @transform_0, window_bounds = array<i64: 2, 4, 128>}, {transform_indices = @transform_1, window_bounds = array<i64: 2, 1, 128>}, {transform_indices = @transform_2, window_bounds = array<i64: 1, 2, 4>}, {transform_indices = @transform_3, window_bounds = array<i64: 1, 2, 4>}]} {
    %c0_i32 = arith.constant 0 : i32
    %0 = arith.cmpi eq, %arg1, %c0_i32 : i32
    %1 = arith.extui %0 : i1 to i32
    %c0_i32_0 = arith.constant 0 : i32
    %2 = arith.cmpi ne, %1, %c0_i32_0 : i32
    scf.if %2 {
      %cst = arith.constant 0.000000e+00 : f32
      %22 = vector.broadcast %cst : f32 to vector<2x4x128xf32>
      %c0_20 = arith.constant 0 : index
      %c0_21 = arith.constant 0 : index
      %c0_22 = arith.constant 0 : index
      %23 = vector.load %arg6[%c0_20, %c0_21, %c0_22] : memref<2x4x128xf32, #tpu.memory_space<vmem>>, vector<2x4x128xf32>
      tpu.vector_store %arg6[%c0_20, %c0_21, %c0_22], %22 {strides = array<i32>} : memref<2x4x128xf32, #tpu.memory_space<vmem>>, vector<2x4x128xf32>,
      %cst_23 = arith.constant 0.000000e+00 : f32
      %24 = vector.broadcast %cst_23 : f32 to vector<2x4x128xf32>
      %c0_24 = arith.constant 0 : index
      %c0_25 = arith.constant 0 : index
      %c0_26 = arith.constant 0 : index
      %25 = vector.load %arg7[%c0_24, %c0_25, %c0_26] : memref<2x4x128xf32, #tpu.memory_space<vmem>>, vector<2x4x128xf32>
      tpu.vector_store %arg7[%c0_24, %c0_25, %c0_26], %24 {strides = array<i32>} : memref<2x4x128xf32, #tpu.memory_space<vmem>>, vector<2x4x128xf32>,
    } else {
    }
    %c0 = arith.constant 0 : index
    %c0_1 = arith.constant 0 : index
    %c0_2 = arith.constant 0 : index
    %3 = vector.load %arg2[%c0, %c0_1, %c0_2] : memref<2x4x128xf32, #tpu.memory_space<vmem>>, vector<2x4x128xf32>
    %c0_3 = arith.constant 0 : index
    %c0_4 = arith.constant 0 : index
    %c0_5 = arith.constant 0 : index
    %4 = vector.load %arg3[%c0_3, %c0_4, %c0_5] : memref<2x1x128xi32, #tpu.memory_space<vmem>>, vector<2x1x128xi32>
    %5 = tpu.iota {dimensions = array<i32: 1>} : vector<2x4x128xi32>
    %6 = vector.broadcast %4 : vector<2x1x128xi32> to vector<2x4x128xi32>
    %7 = arith.cmpi eq, %6, %5 : vector<2x4x128xi32>
    %8 = arith.extui %7 : vector<2x4x128xi1> to vector<2x4x128xi32>
    %9 = arith.sitofp %8 : vector<2x4x128xi32> to vector<2x4x128xf32>
    %c0_6 = arith.constant 0 : index
    %c0_7 = arith.constant 0 : index
    %c0_8 = arith.constant 0 : index
    %10 = vector.load %arg6[%c0_6, %c0_7, %c0_8] : memref<2x4x128xf32, #tpu.memory_space<vmem>>, vector<2x4x128xf32>
    %11 = arith.mulf %3, %9 : vector<2x4x128xf32>
    %12 = arith.addf %10, %11 : vector<2x4x128xf32>
    %c0_9 = arith.constant 0 : index
    %c0_10 = arith.constant 0 : index
    %c0_11 = arith.constant 0 : index
    %13 = vector.load %arg6[%c0_9, %c0_10, %c0_11] : memref<2x4x128xf32, #tpu.memory_space<vmem>>, vector<2x4x128xf32>
    tpu.vector_store %arg6[%c0_9, %c0_10, %c0_11], %12 {strides = array<i32>} : memref<2x4x128xf32, #tpu.memory_space<vmem>>, vector<2x4x128xf32>,
    %c0_12 = arith.constant 0 : index
    %c0_13 = arith.constant 0 : index
    %c0_14 = arith.constant 0 : index
    %14 = vector.load %arg7[%c0_12, %c0_13, %c0_14] : memref<2x4x128xf32, #tpu.memory_space<vmem>>, vector<2x4x128xf32>
    %15 = arith.mulf %3, %3 : vector<2x4x128xf32>
    %16 = arith.addf %15, %9 : vector<2x4x128xf32>
    %17 = arith.addf %14, %16 : vector<2x4x128xf32>
    %c0_15 = arith.constant 0 : index
    %c0_16 = arith.constant 0 : index
    %c0_17 = arith.constant 0 : index
    %18 = vector.load %arg7[%c0_15, %c0_16, %c0_17] : memref<2x4x128xf32, #tpu.memory_space<vmem>>, vector<2x4x128xf32>
    tpu.vector_store %arg7[%c0_15, %c0_16, %c0_17], %17 {strides = array<i32>} : memref<2x4x128xf32, #tpu.memory_space<vmem>>, vector<2x4x128xf32>,
    %c0_i32_18 = arith.constant 0 : i32
    %19 = arith.cmpi eq, %arg1, %c0_i32_18 : i32
    %20 = arith.extui %19 : i1 to i32
    %c0_i32_19 = arith.constant 0 : i32
    %21 = arith.cmpi ne, %20, %c0_i32_19 : i32
    scf.if %21 {
      %c0_20 = arith.constant 0 : index
      %c0_21 = arith.constant 0 : index
      %c0_22 = arith.constant 0 : index
      %22 = vector.load %arg6[%c0_20, %c0_21, %c0_22] : memref<2x4x128xf32, #tpu.memory_space<vmem>>, vector<2x4x128xf32>
      %cst = arith.constant dense<0.000000e+00> : vector<2x4xf32>
      %23 = vector.multi_reduction <add>, %22, %cst [2] : vector<2x4x128xf32> to vector<2x4xf32>
      %c0_23 = arith.constant 0 : index
      %c0_24 = arith.constant 0 : index
      %c0_25 = arith.constant 0 : index
      %24 = vector.load %arg4[%c0_23, %c0_24, %c0_25] : memref<1x2x4xf32, #tpu.memory_space<vmem>>, vector<1x2x4xf32>
      %25 = vector.shape_cast %24 : vector<1x2x4xf32> to vector<2x4xf32>
      %26 = vector.shape_cast %23 : vector<2x4xf32> to vector<1x2x4xf32>
      tpu.vector_store %arg4[%c0_23, %c0_24, %c0_25], %26 {strides = array<i32>} : memref<1x2x4xf32, #tpu.memory_space<vmem>>, vector<1x2x4xf32>,
      %c0_26 = arith.constant 0 : index
      %c0_27 = arith.constant 0 : index
      %c0_28 = arith.constant 0 : index
      %27 = vector.load %arg7[%c0_26, %c0_27, %c0_28] : memref<2x4x128xf32, #tpu.memory_space<vmem>>, vector<2x4x128xf32>
      %cst_29 = arith.constant dense<0.000000e+00> : vector<2x4xf32>
      %28 = vector.multi_reduction <add>, %27, %cst_29 [2] : vector<2x4x128xf32> to vector<2x4xf32>
      %c0_30 = arith.constant 0 : index
      %c0_31 = arith.constant 0 : index
      %c0_32 = arith.constant 0 : index
      %29 = vector.load %arg5[%c0_30, %c0_31, %c0_32] : memref<1x2x4xf32, #tpu.memory_space<vmem>>, vector<1x2x4xf32>
      %30 = vector.shape_cast %29 : vector<1x2x4xf32> to vector<2x4xf32>
      %31 = vector.shape_cast %28 : vector<2x4xf32> to vector<1x2x4xf32>
      tpu.vector_store %arg5[%c0_30, %c0_31, %c0_32], %31 {strides = array<i32>} : memref<1x2x4xf32, #tpu.memory_space<vmem>>, vector<1x2x4xf32>,
    } else {
    }
    return
  }
  func.func @transform_0(%arg0: i32, %arg1: i32) -> (i32, i32, i32) {
    %c1_i32 = arith.constant 1 : i32
    %0 = arith.muli %arg0, %c1_i32 : i32
    %1 = arith.addi %0, %arg1 : i32
    %c0_i32 = arith.constant 0 : i32
    %c0_i32_0 = arith.constant 0 : i32
    %c0_i32_1 = arith.constant 0 : i32
    return %c0_i32, %c0_i32_0, %1 : i32, i32, i32
  }
  func.func @transform_1(%arg0: i32, %arg1: i32) -> (i32, i32, i32) {
    %c1_i32 = arith.constant 1 : i32
    %0 = arith.muli %arg0, %c1_i32 : i32
    %1 = arith.addi %0, %arg1 : i32
    %c0_i32 = arith.constant 0 : i32
    %c0_i32_0 = arith.constant 0 : i32
    %c0_i32_1 = arith.constant 0 : i32
    return %c0_i32, %c0_i32_0, %1 : i32, i32, i32
  }
  func.func @transform_2(%arg0: i32, %arg1: i32) -> (i32, i32, i32) {
    %c0_i32 = arith.constant 0 : i32
    %c0_i32_0 = arith.constant 0 : i32
    %c0_i32_1 = arith.constant 0 : i32
    return %arg0, %c0_i32, %c0_i32_0 : i32, i32, i32
  }
  func.func @transform_3(%arg0: i32, %arg1: i32) -> (i32, i32, i32) {
    %c0_i32 = arith.constant 0 : i32
    %c0_i32_0 = arith.constant 0 : i32
    %c0_i32_1 = arith.constant 0 : i32
    return %arg0, %c0_i32, %c0_i32_0 : i32, i32, i32
  }
}

</mosaic_0001>

<bundles_post_ra>
// kernel: soft_dice_loss_squared.1
= control target key start
LH: loop header
LB: loop body
LE: loop exit
PB: predicated region body
PF: predicated region fallthrough
CT: control target
= control target key end

     0   :  { %s634_s12 = smov 0   ;;  %s636_s13 = smov 0   ;;  %s716_s0 = inlined_call_operand.vmem [shape: f32[2,4,256], index: 0, kind: input, shape index: {}]   ;;  %s717_s1 = inlined_call_operand.vmem [shape: s32[2,1,256], index: 1, kind: input, shape index: {}]   ;;  %s718_s2 = inlined_call_operand.vmem [shape: f32[2,2,4], index: 2, kind: output, shape index: {0}]   ;;  %s719_s3 = inlined_call_operand.vmem [shape: f32[2,2,4], index: 3, kind: output, shape index: {1}]  }
   0x1   :  { %s638_s14 = smov 0   ;;  %s640_s15 = smov 0  }
   0x2   :  { %s642_s16 = smov 0  }
   0x3 LB: > { %s26_s17 = sadd.s32 1, %s607_s15  ;;  %p42_p1 = scmp.ne.s32.totalorder %s599_s13, %s595_s12  ;;  %s611_s16 = sphi %s642_s16, %s14_s16   ;;  %s607_s15 = sphi %s640_s15, %s724_s15   ;;  %s603_s14 = sphi %s638_s14, %s723_s14   ;;  %s599_s13 = sphi %s636_s13, %s722_s13   ;;  %s595_s12 = sphi %s634_s12, %s721_s12  }
   0x4   : > { %p28_p0 = scmp.ge.s32.totalorder %s26_s17, 2  ;;  %p43_p2 = scmp.eq.s32.totalorder %s611_s16, 0 }
   0x5   : > { %s35_s20 = sadd.s32 1, %s599_s13  ;;  %p517_p5 = scmp.ge.s32.totalorder %s611_s16, 2 }
   0x6   : > { %s726_s17 = smov (%p28_p0, %s26_s17), 0  ;;  %p665_p3 = por %p43_p2, %p42_p1 }
   0x7   : > { %s32_s19 = ssub.s32 %s607_s15, %s726_s17  ;;  %148 = sbr.rel (%p517_p5) target bundleno = 28 (0x1c), region = 16 }
   0x8   : > { %p33_p4 = scmp.eq.s32.totalorder %s32_s19, 0 }
   0xa   : > { %s673_s21 = scalar_select %p33_p4, %s599_s13, %s35_s20  }
   0xe   : > { %151 = sbr.rel (!%p665_p3) target bundleno = 21 (0x15), region = 20  ;;  %s153_s22 = sand.u32 (%p665_p3), 1, %s599_s13  }
   0xf   : > { %s519_s23 = sshll.u32 (%p665_p3), %s607_s15, 2  ;;  %s518_s24 = sshll.u32 (%p665_p3), %s153_s22, 3 }
  0x10   : > { %s158_s27 = scalar_lea.vmem (%p665_p3), %s716_s0, %s519_s23  ;;  %s155_s28 = scalar_lea.vmem (%p665_p3), [#allocation4], %s518_s24 }
  0x11   : > { %v174_v0 = vld [vmem:[%s158_s27] sm:$0xf] (%p665_p3)  ;;  %v176_v1 = vld [vmem:[%s158_s27 + $0x8] sm:$0xf] (%p665_p3) }
  0x12   : > { %175 = vst [vmem:[%s155_s28] sm:$0xf] (%p665_p3), %v174_v0  ;;  %177 = vst [vmem:[%s155_s28 + $0x4] sm:$0xf] (%p665_p3), %v176_v1 }
  0x15 PF: > { %204 = sbr.rel (!%p665_p3) target bundleno = 28 (0x1c), region = 61  ;;  %s206_s29 = sand.u32 (%p665_p3), 1, %s599_s13  }
  0x16   : > { %s210_s5 = scalar_lea.vmem (%p665_p3), %s717_s1, %s607_s15  ;;  %s520_s6 = sshll.u32 (%p665_p3), %s206_s29, 1 }
  0x17   : > { %v226_v2 = vld [vmem:[%s210_s5] sm:$0x1] (%p665_p3)  ;;  %v228_v3 = vld [vmem:[%s210_s5 + $0x2] sm:$0x1] (%p665_p3)  ;;  %s208_s7 = scalar_lea.vmem (%p665_p3), [#allocation5], %s520_s6 }
  0x18   : > { %227 = vst [vmem:[%s208_s7] sm:$0x1] (%p665_p3), %v226_v2  ;;  %229 = vst [vmem:[%s208_s7 + $0x1] sm:$0x1] (%p665_p3), %v228_v3 }
  0x1c PF: > { %p521_p6 = scmp.ge.s32.totalorder %s611_s16, 1  ;;  %p247_p7 = scmp.lt.s32.totalorder %s611_s16, 3 }
  0x1e   : > { %p248_p8 = pnand %p521_p6, %p247_p7 }
  0x1f   : > { %s254_s8 = sand.u32 (!%p248_p8), 1, %s595_s12   ;;  %v313_v4 = vlaneseq (!%p248_p8)  ;;  %v613_v5 = vmov (!%p248_p8), 0.0   ;;  %vm352_vm2 = vcmask (!%p248_p8), 1043456   ;;  %p293_p9 = scmp.lt.s32.totalorder (!%p248_p8), %s603_s14, 1  ;;  %vm371_vm3 = vcmask (!%p248_p8), 1041409  }
  0x20   : > { %251 = sbr.rel (%p248_p8) target bundleno = 201 (0xc9), region = 95  ;;  %s522_s9 = sshll.u32 (!%p248_p8), %s254_s8, 3  ;;  %307 = vst [vmem:[#allocation3] sm:$0xf] (!%p248_p8), %v613_v5  ;;  %305 = vst [vmem:[#allocation2] sm:$0xf] (!%p248_p8), %v613_v5 }
  0x21   : > { %s523_s10 = sshll.u32 (!%p248_p8), %s254_s8, 1  ;;  %306 = vst [vmem:[#allocation2 + $0x4] sm:$0xf] (!%p248_p8), %v613_v5  ;;  %308 = vst [vmem:[#allocation3 + $0x4] sm:$0xf] (!%p248_p8), %v613_v5  ;;  %v314_v6 = vshrl.u32 (!%p248_p8), %v313_v4, 7 }
  0x22   : > { %v362_v7 = vand.u32 (!%p248_p8), 127, %v313_v4  ;;  %s256_s11 = scalar_lea.vmem (!%p248_p8), [#allocation4], %s522_s9  ;;  %s263_s18 = scalar_lea.vmem (!%p248_p8), [#allocation5], %s523_s10  ;;  %vm374_vm4 = vcmask (!%p248_p8), 25600  }
  0x23   : > { %v309_v8 = vld [vmem:[%s256_s11] sm:$0xf] (!%p248_p8)  ;;  %v526_v9 = vld [vmem:[%s263_s18] ss:$0 sm:$0xff] (!%p248_p8)  ;;  %v310_v10 = vld [vmem:[%s256_s11 + $0x4] sm:$0xf] (!%p248_p8) }
  0x24   : > { %vm323_vm0 = vcmp.eq.s32.totalorder (!%p248_p8), %v526_v9, %v314_v6  ;;  %v339_v11 = vmul.f32 (!%p248_p8), %v309_v8, %v309_v8  ;;  %v527_v12 = vld [vmem:[%s263_s18 + $0x1] ss:$0 sm:$0xff] (!%p248_p8)  ;;  %v340_v13 = vmul.f32 (!%p248_p8), %v310_v10, %v310_v10  ;;  %v365_v14 = vsub.s32 (!%p248_p8), %v362_v7, %v314_v6 }
  0x25   : > { %v528_v15 = vsel (!%p248_p8), %vm323_vm0, 1.0, %v613_v5  ;;  %vm324_vm1 = vcmp.eq.s32.totalorder (!%p248_p8), %v527_v12, %v314_v6 }
  0x26   : > { %v341_v16 = vadd.f32 (!%p248_p8), %v528_v15, %v339_v11  ;;  %v331_v17 = vmul.f32 (!%p248_p8), %v528_v15, %v309_v8  ;;  %v529_v18 = vsel (!%p248_p8), %vm324_vm1, 1.0, %v613_v5 }
  0x27   : > { %v342_v19 = vadd.f32 %v529_v18, %v340_v13  ;;  %v332_v20 = vmul.f32 %v529_v18, %v310_v10  ;;  %v337_v21 = vld [vmem:[#allocation3] sm:$0xf]  ;;  %v329_v22 = vld [vmem:[#allocation2] sm:$0xf]  ;;  %s728_s14 = smov (!%p293_p9, %s603_s14), 1 }
  0x28   : > { %v338_v23 = vld [vmem:[#allocation3 + $0x4] sm:$0xf]  ;;  %v343_v24 = vadd.f32 %v341_v16, %v337_v21  ;;  %v333_v25 = vadd.f32 %v331_v17, %v329_v22  ;;  %v330_v27 = vld [vmem:[#allocation2 + $0x4] sm:$0xf]  ;;  %s524_s12 = sshll.u32 %s728_s14, 1 }
  0x29   : > { %v344_v26 = vadd.f32 %v342_v19, %v338_v23  ;;  %v334_v28 = vadd.f32 %v332_v20, %v330_v27  ;;  %s300_s22 = scalar_lea.vmem %s719_s3, %s524_s12  ;;  %s296_s25 = scalar_lea.vmem %s718_s2, %s524_s12 }
  0x2a   : > { %345 = vst [vmem:[#allocation3] sm:$0xf] %v343_v24  ;;  %335 = vst [vmem:[#allocation2] sm:$0xf] %v333_v25 }
  0x2b   : > { %346 = vst [vmem:[#allocation3 + $0x4] sm:$0xf] %v344_v26  ;;  %336 = vst [vmem:[#allocation2 + $0x4] sm:$0xf] %v334_v28 }
  0x31   : > { %v376_v29 = vld [vmem:[#allocation3] sm:$0xf]  ;;  %v350_v30 = vld [vmem:[#allocation2] sm:$0xf] }
  0x32   : > { %v377_v31 = vld [vmem:[#allocation3 + $0x4] sm:$0xf]  ;;  %v378_v32 = vsel %vm352_vm2, %v376_v29, 0.0  ;;  %v353_v33 = vsel %vm352_vm2, %v350_v30, 0.0  ;;  %v351_v34 = vld [vmem:[#allocation2 + $0x4] sm:$0xf] }
  0x33   : > { %379 = vadd.xlane.f32.xlu1 %v378_v32  ;;  %354 = vadd.xlane.f32.xlu0 %v353_v33  ;;  %v381_v35 = vsel %vm352_vm2, %v377_v31, 0.0  ;;  %v356_v36 = vsel %vm352_vm2, %v351_v34, 0.0 }
  0x37   : > { %382 = vadd.xlane.f32.xlu1 %v381_v35  ;;  %357 = vadd.xlane.f32.xlu0 %v356_v36 }
  0xc0   : > { %v380_v37 = vpop.xlane.xlu1 %379  ;;  %v355_v38 = vpop.xlane.xlu0 %354 }
  0xc1   : > { %v389_v41 = vrot.slane %v380_v37, %v365_v14  ;;  %v366_v42 = vrot.slane %v355_v38, %v365_v14 }
  0xc4   : > { %v383_v39 = vpop.xlane.xlu1 %382  ;;  %v358_v40 = vpop.xlane.xlu0 %357 }
  0xc5   : > { %v393_v43 = vrot.slane %v383_v39, %v365_v14  ;;  %v370_v44 = vrot.slane %v358_v40, %v365_v14 }
  0xc7   : > { %v394_v45 = vsel %vm371_vm3, %v393_v43, %v389_v41  ;;  %v372_v46 = vsel %vm371_vm3, %v370_v44, %v366_v42 }
  0xc8   : > { %396 = vst.msk [vmem:[%s300_s22] sm:$0x3] %vm374_vm4, %v394_v45  ;;  %375 = vst.msk [vmem:[%s296_s25] sm:$0x3] %vm374_vm4, %v372_v46 }
  0xc9 PF: > { %s14_s16 = sadd.s32 1, %s611_s16   ;;  %s721_s12 = smov %s599_s13 }
  0xca   : > { %p11_p10 = scmp.ge.s32.totalorder %s14_s16, 4   ;;  %s722_s13 = smov %s673_s21 }
  0xcb   : > { %s723_s14 = smov %s607_s15  ;;  %s724_s15 = smov %s726_s17 }
  0xcc   :  { %13 = sbr.rel (!%p11_p10) target bundleno = 3 (0x3), region = 166 }

</bundles_post_ra>
